<compile_context>
chip_gen: v5e
topology: v5e:2x2
jax: 0.10.0
libtpu: 0.0.40
codegen_flags: <defaults>
</compile_context>

<pallas_src>
import functools

import jax
import jax.numpy as jnp
from jax.experimental import pallas as pl
from jax.experimental.pallas import tpu as pltpu

_LANE = 128
_SUBLANE = 8
_MAX_ROW_BLOCK = 512                 # sublane-axis tile cap
_TARGET_BLOCK_BYTES = 8 << 20        # ~8 MiB per input block
_SMALL_INPUT_BYTES = 1 << 20         # below this, plain jnp is faster than a launch


def _round_up(x, m):
    return ((x + m - 1) // m) * m


def _choose_blocks(R, S, itemsize):
    """Pick (tr, ts): large lane-dense blocks, cdiv grid handles ragged edges."""
    tr = min(_round_up(R, _SUBLANE), _MAX_ROW_BLOCK)
    # Prefer >=2 row-steps so the "parallel" row axis can shard contiguous HBM
    # row ranges across v7x's two TensorCores.
    if R > _SUBLANE and pl.cdiv(R, tr) < 2:
        tr = max(_SUBLANE, _round_up(pl.cdiv(R, 2), _SUBLANE))
    # Widen the lane tile toward the per-block byte target given tr.
    ts_cap = max(_LANE, ((_TARGET_BLOCK_BYTES // (itemsize * tr)) // _LANE) * _LANE)
    ts = min(_round_up(S, _LANE), ts_cap)
    return tr, ts


# ------------------------------- kernel --------------------------------------

def _affine_kernel(x_ref, mul_ref, add_ref, o_ref):
    # o = mul * (x + add); mul/add blocks are (tr,1) or (1,ts) and broadcast on VPU.
    # Compute in f32, store in the (possibly narrower) input dtype.
    x = x_ref[...].astype(jnp.float32)
    o_ref[...] = (mul_ref[...] * (x + add_ref[...])).astype(o_ref.dtype)


# ---------------------------- Pallas wrapper ----------------------------------

def _affine_pallas(x2d, mul2d, add2d, params_per_row):
    """y = mul * (x + add) on a 2-D slab, native dtype in/out.

    x2d: (R, S) any float dtype.
    params_per_row=True : mul2d/add2d are (R, 1) f32  (broadcast over lanes).
    params_per_row=False: mul2d/add2d are (1, S) f32  (broadcast over sublanes).
    """
    R, S = x2d.shape
    out_dtype = x2d.dtype
    itemsize = x2d.dtype.itemsize
    tr, ts = _choose_blocks(R, S, itemsize)
    grid = (pl.cdiv(R, tr), pl.cdiv(S, ts))

    if params_per_row:
        p_spec = pl.BlockSpec((tr, 1), lambda i, j: (i, 0))
        p_block_bytes = tr * 4
    else:
        p_spec = pl.BlockSpec((1, ts), lambda i, j: (0, j))
        p_block_bytes = ts * 4

    x_block_bytes = tr * ts * itemsize
    o_block_bytes = tr * ts * out_dtype.itemsize
    # Double-buffered in/out + two param blocks + compiler scratch margin.
    vmem_plan = 2 * (x_block_bytes + o_block_bytes + 2 * p_block_bytes) + (2 << 20)
    vmem_limit = int(max(16 << 20, min(48 << 20, vmem_plan)))

    return pl.pallas_call(
        _affine_kernel,
        out_shape=jax.ShapeDtypeStruct((R, S), out_dtype),
        grid_spec=pltpu.PrefetchScalarGridSpec(
            num_scalar_prefetch=0,
            grid=grid,
            in_specs=[
                pl.BlockSpec((tr, ts), lambda i, j: (i, j)),
                p_spec,
                p_spec,
            ],
            out_specs=pl.BlockSpec((tr, ts), lambda i, j: (i, j)),
        ),
        compiler_params=pltpu.CompilerParams(
            dimension_semantics=("parallel", "parallel"),
            vmem_limit_bytes=vmem_limit,
        ),
        cost_estimate=pl.CostEstimate(
            flops=2 * R * S,
            transcendentals=0,
            bytes_accessed=R * S * (itemsize + out_dtype.itemsize) + 8 * (R + S),
        ),
    )(x2d, mul2d, add2d)


# ------------------------------ module forward --------------------------------

def actnorm_forward(x, loc, scale, logdet=False, reverse=False, force_pallas=False):
    """ActNorm.forward (reverse=False) / ActNorm.reverse (reverse=True).

    x:     (N, C, H, W) or (N, C), any float dtype (output matches input dtype)
    loc:   (1, C, 1, 1)
    scale: (1, C, 1, 1)
    Returns h, or (h, logdet_vec) when logdet=True (forward direction only).
    """
    loc_c = loc.reshape(-1).astype(jnp.float32)      # (C,)
    scale_c = scale.reshape(-1).astype(jnp.float32)  # (C,)
    if reverse:
        # x/scale - loc  ==  (1/scale) * (x + (-loc*scale))  -> same kernel shape.
        mul_c, add_c = 1.0 / scale_c, -loc_c * scale_c
    else:
        mul_c, add_c = scale_c, loc_c

    squeeze = (x.ndim == 2)
    if squeeze:
        N, C = x.shape
        H = W = 1
    else:
        N, C, H, W = x.shape

    small = (x.size * x.dtype.itemsize) < _SMALL_INPUT_BYTES
    if small and not force_pallas:
        # Tiny tensors: fused XLA elementwise beats the fixed pallas_call launch cost.
        if squeeze:
            h = (mul_c.reshape(1, C) * (x.astype(jnp.float32) + add_c.reshape(1, C))
                 ).astype(x.dtype)
        else:
            m4 = mul_c.reshape(1, C, 1, 1)
            a4 = add_c.reshape(1, C, 1, 1)
            h = (m4 * (x.astype(jnp.float32) + a4)).astype(x.dtype)
    else:
        if squeeze:
            # Channels already sit on the lane axis -> broadcast params over rows.
            h = _affine_pallas(x, mul_c.reshape(1, C), add_c.reshape(1, C),
                               params_per_row=False)
        else:
            # View as (N*C, H*W): spatial axis lane-dense, per-row params broadcast.
            x2d = x.reshape(N * C, H * W)
            mul_col = jnp.tile(mul_c, N).reshape(N * C, 1)   # tiny (N*C,1) glue
            add_col = jnp.tile(add_c, N).reshape(N * C, 1)
            h = _affine_pallas(x2d, mul_col, add_col,
                               params_per_row=True).reshape(N, C, H, W)

    if reverse:
        return h

    if logdet:
        # C-element reduction: plain jnp, no extra kernel launch.
        ld = (H * W) * jnp.sum(jnp.log(jnp.abs(scale_c)))
        ld_vec = jnp.broadcast_to(ld, (x.shape[0],)).astype(x.dtype)
        return h, ld_vec
    return h


# ----------------------------------- main --------------------------------------

if __name__ == "__main__":
    key = jax.random.PRNGKey(0)
    k_x, k_loc, k_scale, k_x2, k_xr = jax.random.split(key, 5)

    # Small shapes consistent with the module: NCHW feature map + (1,C,1,1) params.
    N, C, H, W = 2, 8, 16, 16
    x = jax.random.normal(k_x, (N, C, H, W), jnp.float32)
    loc = 0.1 * jax.random.normal(k_loc, (1, C, 1, 1), jnp.float32)
    scale = 1.0 + 0.1 * jax.random.normal(k_scale, (1, C, 1, 1), jnp.float32)

    # Forward + logdet through the Pallas kernel (force_pallas: test shapes are tiny).
    fwd = jax.jit(functools.partial(actnorm_forward, logdet=True, force_pallas=True))
    h, ld = jax.block_until_ready(fwd(x, loc, scale))
    ref_h = scale * (x + loc)
    ref_ld = (H * W) * jnp.sum(jnp.log(jnp.abs(scale))) * jnp.ones((N,), jnp.float32)
    assert h.shape == (N, C, H, W) and h.dtype == x.dtype
    assert bool(jnp.allclose(h, ref_h, atol=1e-5, rtol=1e-5))
    assert ld.shape == (N,)
    assert bool(jnp.allclose(ld, ref_ld, atol=1e-4, rtol=1e-5))

    # Ragged (non 8x128-aligned) shape exercises the cdiv edge-block path.
    Nr, Cr, Hr, Wr = 2, 7, 17, 19
    xr = jax.random.normal(k_xr, (Nr, Cr, Hr, Wr), jnp.float32)
    locr = 0.1 * jax.random.normal(k_loc, (1, Cr, 1, 1), jnp.float32)
    scaler = 1.0 + 0.1 * jax.random.normal(k_scale, (1, Cr, 1, 1), jnp.float32)
    hr = jax.block_until_ready(
        jax.jit(functools.partial(actnorm_forward, force_pallas=True))(xr, locr, scaler))
    assert bool(jnp.allclose(hr, scaler * (xr + locr), atol=1e-5, rtol=1e-5))

    # bf16 input stays bf16 end-to-end (native-dtype HBM traffic).
    xb = x.astype(jnp.bfloat16)
    hb = jax.block_until_ready(
        jax.jit(functools.partial(actnorm_forward, force_pallas=True))(xb, loc, scale))
    ref_hb = (scale * (xb.astype(jnp.float32) + loc)).astype(jnp.bfloat16)
    assert hb.dtype == jnp.bfloat16
    assert bool(jnp.allclose(hb.astype(jnp.float32), ref_hb.astype(jnp.float32),
                             atol=3e-2, rtol=3e-2))

    # 2-D (squeeze) path: tiny -> takes the plain-jnp fallback (XLA-fused).
    x2 = jax.random.normal(k_x2, (4, C), jnp.float32)
    h2 = jax.block_until_ready(jax.jit(actnorm_forward)(x2, loc, scale))
    ref_h2 = scale.reshape(1, C) * (x2 + loc.reshape(1, C))
    assert h2.shape == (4, C)
    assert bool(jnp.allclose(h2, ref_h2, atol=1e-5, rtol=1e-5))

    # Reverse path round-trips the forward transform.
    x_rt = jax.block_until_ready(
        jax.jit(functools.partial(actnorm_forward, reverse=True, force_pallas=True))(
            h, loc, scale))
    assert bool(jnp.allclose(x_rt, x, atol=1e-4, rtol=1e-4))

    print("KERNEL_OK")
</pallas_src>

<mosaic_0001>
module attributes {stable_mosaic.version = 11 : i64} {
  func.func @_affine_kernel(%arg0: i32, %arg1: i32, %arg2: memref<8x256xf32, #tpu.memory_space<vmem>>, %arg3: memref<8x1xf32, #tpu.memory_space<vmem>>, %arg4: memref<8x1xf32, #tpu.memory_space<vmem>>, %arg5: memref<8x256xf32, #tpu.memory_space<vmem>>) attributes {dimension_semantics = [#tpu.dimension_semantics<parallel>, #tpu.dimension_semantics<parallel>], iteration_bounds = array<i64: 2, 1>, scalar_prefetch = 0 : i64, scratch_operands = 0 : i64, tpu.core_type = #tpu.core_type<tc>, window_params = [{transform_indices = @transform_0, window_bounds = array<i64: 8, 256>}, {transform_indices = @transform_1, window_bounds = array<i64: 8, 1>}, {transform_indices = @transform_2, window_bounds = array<i64: 8, 1>}, {transform_indices = @transform_3, window_bounds = array<i64: 8, 256>}]} {
    %c0 = arith.constant 0 : index
    %c0_0 = arith.constant 0 : index
    %0 = vector.load %arg2[%c0, %c0_0] : memref<8x256xf32, #tpu.memory_space<vmem>>, vector<8x256xf32>
    %c0_1 = arith.constant 0 : index
    %c0_2 = arith.constant 0 : index
    %1 = vector.load %arg3[%c0_1, %c0_2] : memref<8x1xf32, #tpu.memory_space<vmem>>, vector<8x1xf32>
    %c0_3 = arith.constant 0 : index
    %c0_4 = arith.constant 0 : index
    %2 = vector.load %arg4[%c0_3, %c0_4] : memref<8x1xf32, #tpu.memory_space<vmem>>, vector<8x1xf32>
    %3 = vector.broadcast %2 : vector<8x1xf32> to vector<8x256xf32>
    %4 = arith.addf %0, %3 : vector<8x256xf32>
    %5 = vector.broadcast %1 : vector<8x1xf32> to vector<8x256xf32>
    %6 = arith.mulf %5, %4 : vector<8x256xf32>
    %c0_5 = arith.constant 0 : index
    %c0_6 = arith.constant 0 : index
    %7 = vector.load %arg5[%c0_5, %c0_6] : memref<8x256xf32, #tpu.memory_space<vmem>>, vector<8x256xf32>
    tpu.vector_store %arg5[%c0_5, %c0_6], %6 {strides = array<i32>} : memref<8x256xf32, #tpu.memory_space<vmem>>, vector<8x256xf32>,
    return
  }
  func.func @transform_0(%arg0: i32, %arg1: i32) -> (i32, i32) {
    %c0_i32 = arith.constant 0 : i32
    return %arg0, %arg1 : i32, i32
  }
  func.func @transform_1(%arg0: i32, %arg1: i32) -> (i32, i32) {
    %c0_i32 = arith.constant 0 : i32
    %c0_i32_0 = arith.constant 0 : i32
    return %arg0, %c0_i32 : i32, i32
  }
  func.func @transform_2(%arg0: i32, %arg1: i32) -> (i32, i32) {
    %c0_i32 = arith.constant 0 : i32
    %c0_i32_0 = arith.constant 0 : i32
    return %arg0, %c0_i32 : i32, i32
  }
  func.func @transform_3(%arg0: i32, %arg1: i32) -> (i32, i32) {
    %c0_i32 = arith.constant 0 : i32
    return %arg0, %arg1 : i32, i32
  }
}

</mosaic_0001>

<bundles_post_ra>
// kernel: tile.10
= control target key start
LH: loop header
LB: loop body
LE: loop exit
PB: predicated region body
PF: predicated region fallthrough
CT: control target
= control target key end

     0   :  { %s22_s0 = inlined_call_operand.vmem [shape: f32[8], index: 0, kind: input, shape index: {}]   ;;  %s23_s1 = inlined_call_operand.vmem [shape: f32[2,8], index: 1, kind: output, shape index: {}]  }
   0x1   :  { %v4_v0 = vld [vmem:[%s22_s0] ss:$0 sm:$0xff] }
   0x2   :  { %5 = vst [vmem:[%s23_s1] sm:$0x3] %v4_v0 }

// kernel: tile.0
= control target key start
LH: loop header
LB: loop body
LE: loop exit
PB: predicated region body
PF: predicated region fallthrough
CT: control target
= control target key end

     0   :  { %s66_s8 = smov 125   ;;  %s67_s9 = smov 123   ;;  %vm7_vm0 = vcmask 7168   ;;  %s117_s0 = inlined_call_operand.vmem [shape: f32[2,8], index: 0, kind: input, shape index: {}]   ;;  %s118_s1 = inlined_call_operand.vmem [shape: f32[16,1], index: 1, kind: output, shape index: {}]  }
   0x1   :  { %v4_v0 = vld [vmem:[%s117_s0] sm:$0x3]  ;;  %s65_s0 = smov 127   ;;  %s68_s10 = smov 126  }
   0x2   :  { %5 = vst [vmem:[#allocation0] sm:$0x3] %v4_v0  ;;  %s69_s11 = smov 124   ;;  %s70_s12 = smov 122  }
   0x3   :  { %s71_s13 = smov 121  }
   0x9   :  { %v9_v1 = vld [vmem:[#allocation0] sm:$0x3]  }
   0xa   :  { %v21_v2 = vld [vmem:[#allocation0] sm:$0x3]   ;;  %10 = vrot.lane.b32.xlu0 %v9_v1, %s65_s0 }
   0xb   :  { %22 = vrot.lane.b32.xlu1 %v21_v2, %s66_s8  ;;  %v33_v3 = vld [vmem:[#allocation0] sm:$0x3]  }
   0xc   :  { %34 = vrot.lane.b32.xlu2 %v33_v3, %s67_s9  ;;  %v15_v4 = vld [vmem:[#allocation0] sm:$0x3]  }
   0xd   :  { %v27_v5 = vld [vmem:[#allocation0] sm:$0x3]  }
   0xe   :  { %v39_v6 = vld [vmem:[#allocation0] sm:$0x3]  }
   0xf   :  { %v45_v7 = vld [vmem:[#allocation0] sm:$0x3]  }
  0x10   :  { %v6_v8 = vld [vmem:[#allocation0] sm:$0x3]  }
  0x11   :  { %8 = vst.msk [vmem:[%s118_s1] ss:$8 sm:$0x3] %vm7_vm0, %v6_v8  }
  0x12   :  { %16 = vrot.lane.b32.xlu0 %v15_v4, %s68_s10 }
  0x13   :  { %28 = vrot.lane.b32.xlu1 %v27_v5, %s69_s11 }
  0x14   :  { %40 = vrot.lane.b32.xlu2 %v39_v6, %s70_s12 }
  0x1a   :  { %46 = vrot.lane.b32.xlu0 %v45_v7, %s71_s13 }
  0x66   :  { %v35_v9 = vpop.permute.xlu2 %34  }
  0x67   :  { %55 = vst.msk [vmem:[%s118_s1 + $0x5] ss:$8 sm:$0x3] %vm7_vm0, %v35_v9  }
  0x6e   :  { %v41_v10 = vpop.permute.xlu2 %40  }
  0x6f   :  { %56 = vst.msk [vmem:[%s118_s1 + $0x6] ss:$8 sm:$0x3] %vm7_vm0, %v41_v10  }
  0x7c   :  { %v11_v11 = vpop.permute.xlu0 %10  }
  0x7d   :  { %v23_v12 = vpop.permute.xlu1 %22   ;;  %51 = vst.msk [vmem:[%s118_s1 + $0x1] ss:$8 sm:$0x3] %vm7_vm0, %v11_v11  }
  0x7e   :  { %53 = vst.msk [vmem:[%s118_s1 + $0x3] ss:$8 sm:$0x3] %vm7_vm0, %v23_v12  }
  0x84   :  { %v17_v13 = vpop.permute.xlu0 %16  }
  0x85   :  { %v29_v14 = vpop.permute.xlu1 %28   ;;  %52 = vst.msk [vmem:[%s118_s1 + $0x2] ss:$8 sm:$0x3] %vm7_vm0, %v17_v13  }
  0x86   :  { %54 = vst.msk [vmem:[%s118_s1 + $0x4] ss:$8 sm:$0x3] %vm7_vm0, %v29_v14  }
  0x8c   :  { %v47_v15 = vpop.permute.xlu0 %46  }
  0x8d   :  { %57 = vst.msk [vmem:[%s118_s1 + $0x7] ss:$8 sm:$0x3] %vm7_vm0, %v47_v15  }

// kernel: actnorm_forward.1
= control target key start
LH: loop header
LB: loop body
LE: loop exit
PB: predicated region body
PF: predicated region fallthrough
CT: control target
= control target key end

     0   :  { %s461_s12 = smov 0   ;;  %s463_s13 = smov 0   ;;  %s500_s0 = inlined_call_operand.vmem [shape: f32[16,256], index: 0, kind: input, shape index: {}]   ;;  %s501_s1 = inlined_call_operand.vmem [shape: f32[16,1], index: 1, kind: input, shape index: {}]   ;;  %s502_s2 = inlined_call_operand.vmem [shape: f32[16,1], index: 2, kind: input, shape index: {}]   ;;  %s503_s3 = inlined_call_operand.vmem [shape: f32[16,256], index: 3, kind: output, shape index: {}]  }
   0x1   :  { %s465_s14 = smov 0  }
   0x2 LB: > { %s25_s15 = sadd.s32 1, %s434_s13  ;;  %p379_p0 = scmp.ge.s32.totalorder %s438_s14, 1  ;;  %s438_s14 = sphi %s465_s14, %s13_s14   ;;  %s434_s13 = sphi %s463_s13, %s505_s13   ;;  %s430_s12 = sphi %s461_s12, %s504_s12  }
   0x3   : > { %p27_p1 = scmp.ge.s32.totalorder %s25_s15, 2  ;;  %p176_p2 = scmp.lt.s32.totalorder %s438_s14, 3 }
   0x5   : > { %s507_s15 = smov (%p27_p1, %s25_s15), 0  ;;  %p177_p3 = pnand %p379_p0, %p176_p2 }
   0x6   : > { %p217_p4 = scmp.lt.s32.totalorder (!%p177_p3), %s430_s12, 1 }
   0x7   : > { %180 = sbr.rel (%p177_p3) target bundleno = 143 (0x8f), region = 32 }
   0xc   : > { %v440_v0 = vmov 0   ;;  %s509_s12 = smov (!%p217_p4, %s430_s12), 1 }
   0xd   : > { %415 = vset.pattern.permute.xlu0 %v440_v0  ;;  %s382_s16 = sshll.u32 %s509_s12, 3  ;;  %s388_s23 = sshll.u32 %s509_s12, 4 }
   0xe   : > { %s233_s19 = scalar_lea.vmem %s502_s2, %s382_s16  ;;  %s229_s22 = scalar_lea.vmem %s501_s1, %s382_s16 }
   0xf   : > { %v247_v1 = vld [vmem:[%s233_s19] sm:$0xff]  ;;  %s224_s26 = scalar_lea.vmem %s500_s0, %s388_s23  ;;  %s242_s29 = scalar_lea.vmem %s503_s3, %s388_s23 }
  0x10   : > { %250 = vperm.xlu0 %415, %v247_v1   ;;  %v246_v2 = vld [vmem:[%s229_s22] sm:$0xff]  ;;  %v245_v5 = vld [vmem:[%s224_s26 + $0x8] sm:$0xff] }
  0x11   : > { %v244_v4 = vld [vmem:[%s224_s26] sm:$0xff] }
  0x18   : > { %257 = vperm.xlu0 %415, %v246_v2  }
  0x82   : > { %v251_v3 = vpop.permute.xlu0 %250 }
  0x83   : > { %v253_v6 = vadd.f32 %v251_v3, %v244_v4  ;;  %v254_v7 = vadd.f32 %v251_v3, %v245_v5 }
  0x8a   : > { %v258_v8 = vpop.permute.xlu0 %257 }
  0x8b   : > { %v260_v9 = vmul.f32 %v258_v8, %v253_v6  ;;  %v261_v10 = vmul.f32 %v258_v8, %v254_v7 }
  0x8d   : > { %262 = vst [vmem:[%s242_s29] sm:$0xff] %v260_v9 }
  0x8e   : > { %263 = vst [vmem:[%s242_s29 + $0x8] sm:$0xff] %v261_v10 }
  0x8f PF: > { %s13_s14 = sadd.s32 1, %s438_s14   ;;  %s504_s12 = smov %s434_s13 }
  0x90   : > { %p10_p5 = scmp.ge.s32.totalorder %s13_s14, 4   ;;  %s505_s13 = smov %s507_s15 }
  0x92   :  { %12 = sbr.rel (!%p10_p5) target bundleno = 2 (0x2), region = 68 }

</bundles_post_ra>
